<compile_context>
chip_gen: v5e
topology: v5e:2x2
jax: 0.10.0
libtpu: 0.0.40
codegen_flags: <defaults>
</compile_context>

<pallas_src>
import functools

import jax
import jax.numpy as jnp
from jax.experimental import pallas as pl
from jax.experimental.pallas import tpu as pltpu


# ----------------------------------------------------------------------------- #
# In-kernel math helpers (Mosaic-safe: only exp/abs/where/mul/add/div).
# ----------------------------------------------------------------------------- #

_SQRT_HALF = 0.7071067811865476


def _erf(x):
    # Abramowitz & Stegun 7.1.26 rational approximation, |abs err| < 1.5e-7.
    a1, a2, a3, a4, a5 = 0.254829592, -0.284496736, 1.421413741, -1.453152027, 1.061405429
    p = 0.3275911
    sgn = jnp.where(x < 0.0, -1.0, 1.0)
    ax = jnp.abs(x)
    t = 1.0 / (1.0 + p * ax)
    poly = t * (a1 + t * (a2 + t * (a3 + t * (a4 + t * a5))))
    return sgn * (1.0 - poly * jnp.exp(-ax * ax))


def _gelu_exact(x):
    # nn.GELU() default = exact (erf-based) GELU.
    return 0.5 * x * (1.0 + _erf(x * _SQRT_HALF))


def _excite(pooled, w1_ref, w2_ref):
    """pooled: (C, 1) f32 channel means -> (C, 1) f32 sigmoid gate."""
    w1 = w1_ref[...].astype(jnp.float32)                     # (Cr, C)
    w2 = w2_ref[...].astype(jnp.float32)                     # (C, Cr)
    h = jnp.dot(w1, pooled, preferred_element_type=jnp.float32)   # (Cr, 1)
    h = _gelu_exact(h)
    g = jnp.dot(w2, h, preferred_element_type=jnp.float32)        # (C, 1)
    return jax.nn.sigmoid(g)


# ----------------------------------------------------------------------------- #
# Fused single-pass kernel: per-batch slab resident, pool -> MLP -> scale.
# ----------------------------------------------------------------------------- #

def _se_fused_kernel(x_ref, w1_ref, w2_ref, o_ref):
    xs = x_ref[0].astype(jnp.float32)                        # (C, HW), HW on lanes
    hw = xs.shape[-1]
    pooled = jnp.sum(xs, axis=-1, keepdims=True) * (1.0 / hw)  # (C, 1) f32
    gate = _excite(pooled, w1_ref, w2_ref)                   # (C, 1) f32
    o_ref[0] = (xs * gate).astype(o_ref.dtype)               # lane-dense store


# ----------------------------------------------------------------------------- #
# Two-phase fallback kernel: grid (N, 2, nt).  Phase 0 pools + computes the gate
# into a resident (C, 1) f32 scratch; phase 1 scales.  x is read twice from HBM
# (unavoidable when the slab doesn't fit), but there is no gate HBM round-trip.
# ----------------------------------------------------------------------------- #

def _se_two_phase_kernel(x_ref, w1_ref, w2_ref, o_ref, acc_ref, *, hw):
    p = pl.program_id(1)
    t = pl.program_id(2)
    nt = pl.num_programs(2)
    tile_w = x_ref.shape[2]                                  # static lane-tile width

    @pl.when((p == 0) & (t == 0))
    def _init():
        acc_ref[...] = jnp.zeros_like(acc_ref)

    @pl.when(p == 0)
    def _pool():
        xs = x_ref[0].astype(jnp.float32)                    # (C, T)
        if hw % tile_w != 0:
            # Mask padded lanes of the (possibly) partial last tile.
            lane = jax.lax.broadcasted_iota(jnp.int32, xs.shape, 1)
            xs = jnp.where(t * tile_w + lane < hw, xs, 0.0)
        acc_ref[...] += jnp.sum(xs, axis=-1, keepdims=True)

    @pl.when((p == 0) & (t == nt - 1))
    def _gate():
        pooled = acc_ref[...] * (1.0 / hw)
        acc_ref[...] = _excite(pooled, w1_ref, w2_ref)       # reuse scratch as gate

    @pl.when(p == 1)
    def _scale():
        gate = acc_ref[...]                                  # (C, 1) f32
        o_ref[0] = (x_ref[0].astype(jnp.float32) * gate).astype(o_ref.dtype)


# ----------------------------------------------------------------------------- #
# Wrapper
# ----------------------------------------------------------------------------- #

def _pick_hw_tile(hw, c, itemsize, max_block_bytes):
    """Lane-aligned (multiple of 128) HW tile keeping one (C, T) block under
    max_block_bytes.  T need not divide HW — the pool kernel masks padded lanes."""
    cap = (max_block_bytes // max(1, c * itemsize)) // 128 * 128
    cap = max(128, cap)
    hw_ceil = ((hw + 127) // 128) * 128
    return min(hw_ceil, cap)


def squeeze_excitation(x_nchw, w1, w2, *,
                       fused_slab_bytes=4 * 1024 * 1024,
                       max_block_bytes=4 * 1024 * 1024):
    """x_nchw: (N, C, H, W); w1: (Cr, C); w2: (C, Cr).  Returns (N, C, H, W)."""
    N, C, H, W = x_nchw.shape
    HW = H * W
    Cr = w1.shape[0]
    itemsize = jnp.dtype(x_nchw.dtype).itemsize
    slab_bytes = C * HW * itemsize

    x = x_nchw.reshape(N, C, HW)   # free view: H, W contiguous in NCHW (no transpose)

    if slab_bytes <= fused_slab_bytes:
        # ---- Fused single-pass path: one HBM read + one write of x. ----
        vmem_limit = int(min(64 * 1024 * 1024,
                             max(32 * 1024 * 1024, 6 * slab_bytes + 4 * 1024 * 1024)))
        out = pl.pallas_call(
            _se_fused_kernel,
            out_shape=jax.ShapeDtypeStruct((N, C, HW), x_nchw.dtype),
            grid_spec=pltpu.PrefetchScalarGridSpec(
                num_scalar_prefetch=0,
                grid=(N,),
                in_specs=[
                    pl.BlockSpec((1, C, HW), lambda b: (b, 0, 0)),
                    pl.BlockSpec((Cr, C), lambda b: (0, 0)),
                    pl.BlockSpec((C, Cr), lambda b: (0, 0)),
                ],
                out_specs=pl.BlockSpec((1, C, HW), lambda b: (b, 0, 0)),
            ),
            compiler_params=pltpu.CompilerParams(
                dimension_semantics=("parallel",),
                vmem_limit_bytes=vmem_limit,
            ),
        )(x, w1, w2)
    else:
        # ---- Two-phase fallback: tiled pool sweep, in-kernel gate, tiled scale. ----
        T = _pick_hw_tile(HW, C, itemsize, max_block_bytes)
        nt = pl.cdiv(HW, T)
        block_bytes = C * T * itemsize
        vmem_limit = int(min(64 * 1024 * 1024,
                             max(32 * 1024 * 1024,
                                 4 * block_bytes + C * T * 4 + 4 * 1024 * 1024)))
        kernel = functools.partial(_se_two_phase_kernel, hw=HW)
        out = pl.pallas_call(
            kernel,
            out_shape=jax.ShapeDtypeStruct((N, C, HW), x_nchw.dtype),
            grid_spec=pltpu.PrefetchScalarGridSpec(
                num_scalar_prefetch=0,
                grid=(N, 2, nt),
                in_specs=[
                    pl.BlockSpec((1, C, T), lambda b, p, t: (b, 0, t)),
                    pl.BlockSpec((Cr, C), lambda b, p, t: (0, 0)),
                    pl.BlockSpec((C, Cr), lambda b, p, t: (0, 0)),
                ],
                # During phase 0 the output block index is pinned to (b, 0, 0); it is
                # only ever flushed after phase 1's t=0 step has fully rewritten it,
                # so no garbage is written and phase 0 does no output traffic.
                out_specs=pl.BlockSpec((1, C, T), lambda b, p, t: (b, 0, p * t)),
                scratch_shapes=[pltpu.VMEM((C, 1), jnp.float32)],
            ),
            compiler_params=pltpu.CompilerParams(
                dimension_semantics=("parallel", "arbitrary", "arbitrary"),
                vmem_limit_bytes=vmem_limit,
            ),
        )(x, w1, w2)

    return out.reshape(N, C, H, W)


# ----------------------------------------------------------------------------- #
# Pure-JAX reference (PyTorch semantics) + demo
# ----------------------------------------------------------------------------- #

def _reference(x_nchw, w1, w2):
    pooled = jnp.mean(x_nchw.astype(jnp.float32), axis=(2, 3))          # (N, C)
    h = jax.nn.gelu(pooled @ w1.astype(jnp.float32).T, approximate=False)
    g = jax.nn.sigmoid(h @ w2.astype(jnp.float32).T)                    # (N, C)
    return (x_nchw.astype(jnp.float32) * g[:, :, None, None]).astype(x_nchw.dtype)


if __name__ == "__main__":
    key = jax.random.PRNGKey(0)
    k = jax.random.split(key, 6)

    # ---- Primary (fused single-pass) path. ----
    N, C, H, W = 2, 32, 16, 16
    reduction = 16
    Cr = C // reduction
    x = jax.random.normal(k[0], (N, C, H, W), dtype=jnp.float32)
    w1 = jax.random.normal(k[1], (Cr, C), dtype=jnp.float32) * (1.0 / C) ** 0.5
    w2 = jax.random.normal(k[2], (C, Cr), dtype=jnp.float32) * (1.0 / Cr) ** 0.5

    se = jax.jit(squeeze_excitation)
    out = jax.block_until_ready(se(x, w1, w2))
    ref = _reference(x, w1, w2)
    assert out.shape == (N, C, H, W)
    assert jnp.allclose(out, ref, atol=1e-5, rtol=1e-5), "fused path mismatch"

    # ---- Fallback (two-phase, masked partial tiles) path, forced via tiny budgets.
    #      HW = 24*24 = 576 has no 128-multiple divisor -> exercises lane masking. ----
    N2, C2, H2, W2 = 1, 32, 24, 24
    Cr2 = C2 // 8
    x2 = jax.random.normal(k[3], (N2, C2, H2, W2), dtype=jnp.float32)
    w12 = jax.random.normal(k[4], (Cr2, C2), dtype=jnp.float32) * (1.0 / C2) ** 0.5
    w22 = jax.random.normal(k[5], (C2, Cr2), dtype=jnp.float32) * (1.0 / Cr2) ** 0.5

    se_tiled = jax.jit(functools.partial(
        squeeze_excitation, fused_slab_bytes=0, max_block_bytes=32 * 1024))
    out2 = jax.block_until_ready(se_tiled(x2, w12, w22))
    ref2 = _reference(x2, w12, w22)
    assert out2.shape == (N2, C2, H2, W2)
    assert jnp.allclose(out2, ref2, atol=1e-5, rtol=1e-5), "two-phase path mismatch"

    print("KERNEL_OK")
</pallas_src>

<mosaic_0001>
module attributes {stable_mosaic.version = 11 : i64} {
  func.func @_se_fused_kernel(%arg0: i32, %arg1: memref<1x32x256xf32, #tpu.memory_space<vmem>>, %arg2: memref<2x32xf32, #tpu.memory_space<vmem>>, %arg3: memref<32x2xf32, #tpu.memory_space<vmem>>, %arg4: memref<1x32x256xf32, #tpu.memory_space<vmem>>) attributes {dimension_semantics = [#tpu.dimension_semantics<parallel>], iteration_bounds = array<i64: 2>, scalar_prefetch = 0 : i64, scratch_operands = 0 : i64, tpu.core_type = #tpu.core_type<tc>, window_params = [{transform_indices = @transform_0, window_bounds = array<i64: 1, 32, 256>}, {pipeline_mode = #tpu.pipeline_mode<synchronous>, transform_indices = @transform_1, window_bounds = array<i64: 2, 32>}, {pipeline_mode = #tpu.pipeline_mode<synchronous>, transform_indices = @transform_2, window_bounds = array<i64: 32, 2>}, {transform_indices = @transform_3, window_bounds = array<i64: 1, 32, 256>}]} {
    %c0 = arith.constant 0 : index
    %c0_0 = arith.constant 0 : index
    %c0_1 = arith.constant 0 : index
    %0 = vector.load %arg1[%c0, %c0_0, %c0_1] : memref<1x32x256xf32, #tpu.memory_space<vmem>>, vector<1x32x256xf32>
    %1 = vector.shape_cast %0 : vector<1x32x256xf32> to vector<32x256xf32>
    %cst = arith.constant dense<0.000000e+00> : vector<32xf32>
    %2 = vector.multi_reduction <add>, %1, %cst [1] : vector<32x256xf32> to vector<32xf32>
    %3 = vector.shape_cast %2 : vector<32xf32> to vector<32x1xf32>
    %cst_2 = arith.constant 3.906250e-03 : f32
    %4 = vector.broadcast %cst_2 : f32 to vector<32x1xf32>
    %5 = arith.mulf %3, %4 : vector<32x1xf32>
    %c0_3 = arith.constant 0 : index
    %c0_4 = arith.constant 0 : index
    %6 = vector.load %arg2[%c0_3, %c0_4] : memref<2x32xf32, #tpu.memory_space<vmem>>, vector<2x32xf32>
    %c0_5 = arith.constant 0 : index
    %c0_6 = arith.constant 0 : index
    %7 = vector.load %arg3[%c0_5, %c0_6] : memref<32x2xf32, #tpu.memory_space<vmem>>, vector<32x2xf32>
    %cst_7 = arith.constant dense<0.000000e+00> : vector<2x1xf32>
    %8 = tpu.matmul %6, %5, %cst_7 {dimension_numbers = #tpu.dot_dimension_numbers<[1], [0], [0], [1], [0, 0, 1, 1], [], []>} : vector<2x32xf32>, vector<32x1xf32>, vector<2x1xf32> -> vector<2x1xf32>
    %cst_8 = arith.constant 5.000000e-01 : f32
    %9 = vector.broadcast %cst_8 : f32 to vector<2x1xf32>
    %10 = arith.mulf %9, %8 : vector<2x1xf32>
    %cst_9 = arith.constant 0.707106769 : f32
    %11 = vector.broadcast %cst_9 : f32 to vector<2x1xf32>
    %12 = arith.mulf %8, %11 : vector<2x1xf32>
    %cst_10 = arith.constant 0.000000e+00 : f32
    %13 = vector.broadcast %cst_10 : f32 to vector<2x1xf32>
    %14 = arith.cmpf olt, %12, %13 : vector<2x1xf32>
    %cst_11 = arith.constant -1.000000e+00 : f32
    %cst_12 = arith.constant 1.000000e+00 : f32
    %15 = vector.broadcast %cst_11 : f32 to vector<2x1xf32>
    %16 = vector.broadcast %cst_12 : f32 to vector<2x1xf32>
    %17 = arith.select %14, %15, %16 : vector<2x1xi1>, vector<2x1xf32>
    %18 = math.absf %12 : vector<2x1xf32>
    %cst_13 = arith.constant 0.327591091 : f32
    %19 = vector.broadcast %cst_13 : f32 to vector<2x1xf32>
    %20 = arith.mulf %19, %18 : vector<2x1xf32>
    %cst_14 = arith.constant 1.000000e+00 : f32
    %21 = vector.broadcast %cst_14 : f32 to vector<2x1xf32>
    %22 = arith.addf %21, %20 : vector<2x1xf32>
    %cst_15 = arith.constant 1.000000e+00 : f32
    %23 = vector.broadcast %cst_15 : f32 to vector<2x1xf32>
    %24 = arith.divf %23, %22 : vector<2x1xf32>
    %cst_16 = arith.constant 1.06140542 : f32
    %25 = vector.broadcast %cst_16 : f32 to vector<2x1xf32>
    %26 = arith.mulf %24, %25 : vector<2x1xf32>
    %cst_17 = arith.constant -1.45315206 : f32
    %27 = vector.broadcast %cst_17 : f32 to vector<2x1xf32>
    %28 = arith.addf %27, %26 : vector<2x1xf32>
    %29 = arith.mulf %24, %28 : vector<2x1xf32>
    %cst_18 = arith.constant 1.42141378 : f32
    %30 = vector.broadcast %cst_18 : f32 to vector<2x1xf32>
    %31 = arith.addf %30, %29 : vector<2x1xf32>
    %32 = arith.mulf %24, %31 : vector<2x1xf32>
    %cst_19 = arith.constant -0.284496725 : f32
    %33 = vector.broadcast %cst_19 : f32 to vector<2x1xf32>
    %34 = arith.addf %33, %32 : vector<2x1xf32>
    %35 = arith.mulf %24, %34 : vector<2x1xf32>
    %cst_20 = arith.constant 0.254829586 : f32
    %36 = vector.broadcast %cst_20 : f32 to vector<2x1xf32>
    %37 = arith.addf %36, %35 : vector<2x1xf32>
    %38 = arith.mulf %24, %37 : vector<2x1xf32>
    %cst_21 = arith.constant 0.000000e+00 : f32
    %39 = vector.broadcast %cst_21 : f32 to vector<2x1xf32>
    %40 = arith.subf %39, %18 : vector<2x1xf32>
    %41 = arith.mulf %40, %18 : vector<2x1xf32>
    %42 = math.exp %41 : vector<2x1xf32>
    %43 = arith.mulf %38, %42 : vector<2x1xf32>
    %cst_22 = arith.constant 1.000000e+00 : f32
    %44 = vector.broadcast %cst_22 : f32 to vector<2x1xf32>
    %45 = arith.subf %44, %43 : vector<2x1xf32>
    %46 = arith.mulf %17, %45 : vector<2x1xf32>
    %cst_23 = arith.constant 1.000000e+00 : f32
    %47 = vector.broadcast %cst_23 : f32 to vector<2x1xf32>
    %48 = arith.addf %47, %46 : vector<2x1xf32>
    %49 = arith.mulf %10, %48 : vector<2x1xf32>
    %cst_24 = arith.constant dense<0.000000e+00> : vector<32x1xf32>
    %50 = tpu.matmul %7, %49, %cst_24 {dimension_numbers = #tpu.dot_dimension_numbers<[1], [0], [0], [1], [0, 0, 1, 1], [], []>} : vector<32x2xf32>, vector<2x1xf32>, vector<32x1xf32> -> vector<32x1xf32>
    %51 = arith.negf %50 : vector<32x1xf32>
    %52 = math.exp %51 : vector<32x1xf32>
    %cst_25 = arith.constant 1.000000e+00 : f32
    %53 = vector.broadcast %cst_25 : f32 to vector<32x1xf32>
    %54 = arith.addf %53, %52 : vector<32x1xf32>
    %55 = arith.divf %53, %54 : vector<32x1xf32>
    %56 = vector.broadcast %55 : vector<32x1xf32> to vector<32x256xf32>
    %57 = arith.mulf %1, %56 : vector<32x256xf32>
    %c0_26 = arith.constant 0 : index
    %c0_27 = arith.constant 0 : index
    %c0_28 = arith.constant 0 : index
    %58 = vector.load %arg4[%c0_26, %c0_27, %c0_28] : memref<1x32x256xf32, #tpu.memory_space<vmem>>, vector<1x32x256xf32>
    %59 = vector.shape_cast %58 : vector<1x32x256xf32> to vector<32x256xf32>
    %60 = vector.shape_cast %57 : vector<32x256xf32> to vector<1x32x256xf32>
    tpu.vector_store %arg4[%c0_26, %c0_27, %c0_28], %60 {strides = array<i32>} : memref<1x32x256xf32, #tpu.memory_space<vmem>>, vector<1x32x256xf32>,
    return
  }
  func.func @transform_0(%arg0: i32) -> (i32, i32, i32) {
    %c0_i32 = arith.constant 0 : i32
    %c0_i32_0 = arith.constant 0 : i32
    %c0_i32_1 = arith.constant 0 : i32
    return %arg0, %c0_i32, %c0_i32_0 : i32, i32, i32
  }
  func.func @transform_1(%arg0: i32) -> (i32, i32) {
    %c0_i32 = arith.constant 0 : i32
    %c0_i32_0 = arith.constant 0 : i32
    %c0_i32_1 = arith.constant 0 : i32
    return %c0_i32, %c0_i32_0 : i32, i32
  }
  func.func @transform_2(%arg0: i32) -> (i32, i32) {
    %c0_i32 = arith.constant 0 : i32
    %c0_i32_0 = arith.constant 0 : i32
    %c0_i32_1 = arith.constant 0 : i32
    return %c0_i32, %c0_i32_0 : i32, i32
  }
  func.func @transform_3(%arg0: i32) -> (i32, i32, i32) {
    %c0_i32 = arith.constant 0 : i32
    %c0_i32_0 = arith.constant 0 : i32
    %c0_i32_1 = arith.constant 0 : i32
    return %arg0, %c0_i32, %c0_i32_0 : i32, i32, i32
  }
}

</mosaic_0001>

<bundles_post_ra>
// kernel: squeeze_excitation.1
= control target key start
LH: loop header
LB: loop body
LE: loop exit
PB: predicated region body
PF: predicated region fallthrough
CT: control target
= control target key end

     0   :  { %s565_s12 = smov 0   ;;  %s636_s0 = inlined_call_operand.vmem [shape: f32[2,32,256], index: 0, kind: input, shape index: {}]   ;;  %s637_s1 = inlined_call_operand.vmem [shape: f32[2,32], index: 1, kind: input, shape index: {}]   ;;  %s638_s2 = inlined_call_operand.vmem [shape: f32[32,2], index: 2, kind: input, shape index: {}]   ;;  %s639_s3 = inlined_call_operand.vmem [shape: f32[2,32,256], index: 3, kind: output, shape index: {}]  }
   0x1 LB: > { %s477_s13 = sadd.s32 4294967295, %s541_s12   ;;  %p481_p0 = scmp.ge.s32.totalorder %s541_s12, 1  ;;  %s541_s12 = sphi %s565_s12, %s13_s12  }
   0x2   : > { %p137_p1 = scmp.lt.s32.totalorder %s541_s12, 3 }
   0x4   : > { %p138_p2 = pnand %p481_p0, %p137_p1 }
   0x5   : > { %p161_p3 = scmp.lt.s32.totalorder (!%p138_p2), %s477_s13, 1 }
   0x6   : > { %141 = sbr.rel (%p138_p2) target bundleno = 616 (0x268), region = 32 }
   0xb   : > { %s641_s13 = smov (!%p161_p3, %s477_s13), 1  ;;  %v195_v20 = vld [vmem:[%s637_s1] sm:$0x3]  ;;  %vm200_vm0 = vcmask 261120   ;;  %v543_v51 = vmov 1.0   ;;  %vm277_vm6 = vcmask 1041408  }
   0xc   : > { %s498_s14 = sshll.u32 %s641_s13, 6  ;;  %v196_v57 = vld [vmem:[%s638_s2] sm:$0xff]  ;;  %vm264_vm7 = vcmask 15360   ;;  %v197_v58 = vld [vmem:[%s638_s2 + $0x8] sm:$0xff]  ;;  %v199_v59 = vld [vmem:[%s638_s2 + $0x18] sm:$0xff]  ;;  %v544_v61 = vmov 0  }
   0xd   : > { %s165_s17 = scalar_lea.vmem %s636_s0, %s498_s14  ;;  %v198_v60 = vld [vmem:[%s638_s2 + $0x10] sm:$0xff]  ;;  %512 = vset.pattern.permute.xlu2 %v544_v61  ;;  %514 = vset.pattern.permute.xlu1 %v544_v61  ;;  %s170_s30 = scalar_lea.vmem %s639_s3, %s498_s14 }
   0xe   : > { %v581_v0 = vld [vmem:[%s165_s17 + $0x30] sm:$0xff]  ;;  %v583_v1 = vld [vmem:[%s165_s17 + $0x38] sm:$0xff]  ;;  %v593_v6 = vld [vmem:[%s165_s17 + $0x20] sm:$0xff]  ;;  %513 = vset.pattern.permute.xlu0 %v544_v61 }
   0xf   : > { %v585_v2 = vld [vmem:[%s165_s17 + $0x10] sm:$0xff]  ;;  %v188_v3 = vadd.f32 %v583_v1, %v581_v0  ;;  %v589_v4 = vld [vmem:[%s165_s17 + $0x18] sm:$0xff]  ;;  %v595_v7 = vld [vmem:[%s165_s17 + $0x28] sm:$0xff] }
  0x10   : > { %v182_v5 = vadd.f32 %v589_v4, %v585_v2  ;;  %v597_v8 = vld [vmem:[%s165_s17] sm:$0xff]  ;;  %v599_v9 = vld [vmem:[%s165_s17 + $0x8] sm:$0xff]  ;;  %v185_v10 = vadd.f32 %v595_v7, %v593_v6 }
  0x11   : > { %189 = vadd.xlane.f32.xlu0 %v188_v3  ;;  %v179_v11 = vadd.f32 %v599_v9, %v597_v8 }
  0x12   : > { %183 = vadd.xlane.f32.xlu1 %v182_v5 }
  0x19   : > { %186 = vadd.xlane.f32.xlu0 %v185_v10 }
  0x1a   : > { %180 = vadd.xlane.f32.xlu1 %v179_v11 }
  0x84   : > { %v190_v12 = vpop.xlane.xlu0 %189 }
  0x85   : > { %v194_v13 = vmul.f32 0.00390625, %v190_v12  ;;  %v184_v14 = vpop.xlane.xlu1 %183 }
  0x86   : > { %v192_v18 = vmul.f32 0.00390625, %v184_v14 }
  0x87   : > { %216 = vmatpush.msra.mxu0 %v194_v13 }
  0x8c   : > { %v187_v15 = vpop.xlane.xlu0 %186 }
  0x8d   : > { %v193_v16 = vmul.f32 0.00390625, %v187_v15  ;;  %v181_v17 = vpop.xlane.xlu1 %180 }
  0x8e   : > { %v191_v19 = vmul.f32 0.00390625, %v181_v17 }
  0x8f   : > { %217 = vmatpush.msra.mxu0 %v193_v16 }
  0x91   : > { %218 = vmatpush.msra.mxu0 %v192_v18 }
  0x93   : > { %219 = vmatpush.msra.mxu0 %v191_v19 }
  0x94   : > { %486 = vmatmul.msk.f32.vlgmr.msra.gmra.mxu0 %vm200_vm0, %v195_v20 }
 0x111   : > { %v221_v21 = vpop.f32.mrf.mxu0 }
 0x112   : > { %v225_v22 = vmul.f32 0.70710677, %v221_v21  ;;  %v224_v54 = vmul.f32 0.5, %v221_v21 }
 0x114   : > { %v228_v23 = vand.u32 2147483647, %v225_v22  ;;  %vm226_vm5 = vcmp.lt.f32.partialorder %v225_v22, 0.0 }
 0x115   : > { %v227_v52 = vsel %vm226_vm5, -1.0, %v543_v51 }
 0x116   : > { %v229_v24 = vmul.f32 0.3275911, %v228_v23  ;;  %v255_v36 = vsub.f32 0.0, %v228_v23 }
 0x118   : > { %v230_v25 = vadd.f32 1.0, %v229_v24  ;;  %v256_v39 = vmul.f32 %v255_v36, %v228_v23 }
 0x11a   : > { %515 = vrcp.f32 %v230_v25  ;;  %v242_v29 = vand.u32 2147483648, %v230_v25  ;;  %v240_v31 = vand.u32 2147483647, %v230_v25  ;;  %vm236_vm2 = vweird.f32 %v230_v25 }
 0x11b   : > { %v257_v42 = vmul.f32 1.442695, %v256_v39 }
 0x11c   : > { %v243_v33 = vor.u32 1.1754944e-38, %v242_v29  ;;  %vm241_vm4 = vcmp.eq.f32.partialorder %v240_v31, 8.507059e+37 }
 0x11d   : > { %517 = vpow2.f32 %v257_v42 }
 0x120   : > { %v516_v26 = vpop.eup %515 }
 0x121   : > { %v232_v27 = vmul.f32 %v516_v26, %v230_v25  ;;  %vm237_vm1 = vweird.f32 %v516_v26 }
 0x122   : > { %vm238_vm3 = vmor %vm236_vm2, %vm237_vm1 }
 0x123   : > { %v233_v28 = vsub.f32 1.0, %v232_v27  ;;  %v518_v48 = vpop.eup %517 }
 0x125   : > { %v234_v30 = vmul.f32 %v516_v26, %v233_v28 }
 0x127   : > { %v235_v32 = vadd.f32 %v516_v26, %v234_v30 }
 0x129   : > { %v239_v34 = vsel %vm238_vm3, %v516_v26, %v235_v32 }
 0x12a   : > { %v244_v35 = vsel %vm241_vm4, %v243_v33, %v239_v34 }
 0x12b   : > { %v246_v37 = vmul.f32 1.0614054, %v244_v35 }
 0x12d   : > { %v247_v38 = vadd.f32 -1.4531521, %v246_v37 }
 0x12f   : > { %v248_v40 = vmul.f32 %v247_v38, %v244_v35 }
 0x131   : > { %v249_v41 = vadd.f32 1.4214138, %v248_v40 }
 0x133   : > { %v250_v43 = vmul.f32 %v249_v41, %v244_v35 }
 0x135   : > { %v251_v44 = vadd.f32 -0.28449672, %v250_v43 }
 0x137   : > { %v252_v45 = vmul.f32 %v251_v44, %v244_v35 }
 0x139   : > { %v253_v46 = vadd.f32 0.2548296, %v252_v45 }
 0x13b   : > { %v254_v47 = vmul.f32 %v253_v46, %v244_v35 }
 0x13d   : > { %v259_v49 = vmul.f32 %v518_v48, %v254_v47 }
 0x13f   : > { %v260_v50 = vsub.f32 1.0, %v259_v49 }
 0x141   : > { %v261_v53 = vmul.f32 %v260_v50, %v227_v52 }
 0x143   : > { %v262_v55 = vadd.f32 1.0, %v261_v53 }
 0x145   : > { %v263_v56 = vmul.f32 %v262_v55, %v224_v54 }
 0x147   : > { %487 = vmatpush.msk.msra.mxu1 %vm277_vm6, %v263_v56  ;;  %500 = vmatpush.msk.msra.mxu2 %vm277_vm6, %v263_v56 }
 0x148   : > { %501 = vmatpush.msk.msra.mxu3 %vm277_vm6, %v263_v56  ;;  %488 = vmatmul.msk.f32.vlgmr.msra.gmra.mxu1 %vm264_vm7, %v196_v57 }
 0x149   : > { %489 = vmatmul.msk.f32.vlgmr.msra.gmra.mxu2 %vm264_vm7, %v197_v58  ;;  %491 = vmatmul.msk.f32.vlgmr.msra.gmra.mxu3 %vm264_vm7, %v199_v59 }
 0x151   : > { %490 = vmatmul.msk.f32.gmra.mxu2 %vm264_vm7, %v198_v60 }
 0x1c5   : > { %v298_v62 = vpop.f32.mrf.mxu1 }
 0x1c6   : > { %v492_v63 = vmul.f32 -1.442695, %v298_v62 }
 0x1c8   : > { %519 = vpow2.f32 %v492_v63 }
 0x1cc   : > { %v301_v3 = vpop.f32.mrf.mxu2  ;;  %v307_v5 = vpop.f32.mrf.mxu3 }
 0x1cd   : > { %v493_v10 = vmul.f32 -1.442695, %v301_v3  ;;  %v495_v11 = vmul.f32 -1.442695, %v307_v5 }
 0x1ce   : > { %v520_v12 = vpop.eup %519 }
 0x1cf   : > { %v322_v13 = vadd.f32 1.0, %v520_v12  ;;  %521 = vpow2.f32 %v493_v10 }
 0x1d0   : > { %523 = vpow2.f32 %v495_v11 }
 0x1d1   : > { %525 = vrcp.f32 %v322_v13  ;;  %v337_v22 = vand.u32 2147483648, %v322_v13  ;;  %vm331_vm8 = vweird.f32 %v322_v13  ;;  %v335_v24 = vand.u32 2147483647, %v322_v13 }
 0x1d3   : > { %v338_v27 = vor.u32 1.1754944e-38, %v337_v22  ;;  %vm336_vm11 = vcmp.eq.f32.partialorder %v335_v24, 8.507059e+37 }
 0x1d4   : > { %v304_v14 = vpop.f32.mrf.mxu2 }
 0x1d5   : > { %v522_v15 = vpop.eup %521  ;;  %v494_v16 = vmul.f32 -1.442695, %v304_v14 }
 0x1d6   : > { %v524_v17 = vpop.eup %523  ;;  %v323_v18 = vadd.f32 1.0, %v522_v15 }
 0x1d7   : > { %v526_v19 = vpop.eup %525  ;;  %v325_v20 = vadd.f32 1.0, %v524_v17  ;;  %527 = vpow2.f32 %v494_v16 }
 0x1d8   : > { %529 = vrcp.f32 %v323_v18  ;;  %v327_v21 = vmul.f32 %v526_v19, %v322_v13  ;;  %vm332_vm9 = vweird.f32 %v526_v19  ;;  %v352_v40 = vand.u32 2147483648, %v323_v18 }
 0x1d9   : > { %531 = vrcp.f32 %v325_v20  ;;  %vm333_vm10 = vmor %vm331_vm8, %vm332_vm9  ;;  %vm376_vm12 = vweird.f32 %v325_v20  ;;  %v382_v38 = vand.u32 2147483648, %v325_v20  ;;  %v380_v42 = vand.u32 2147483647, %v325_v20 }
 0x1da   : > { %v328_v23 = vsub.f32 1.0, %v327_v21  ;;  %v350_v43 = vand.u32 2147483647, %v323_v18  ;;  %vm346_vm15 = vweird.f32 %v323_v18  ;;  %v353_v49 = vor.u32 1.1754944e-38, %v352_v40 }
 0x1db   : > { %v383_v47 = vor.u32 1.1754944e-38, %v382_v38  ;;  %vm381_vm2 = vcmp.eq.f32.partialorder %v380_v42, 8.507059e+37 }
 0x1dc   : > { %v329_v25 = vmul.f32 %v526_v19, %v328_v23  ;;  %vm351_vm3 = vcmp.eq.f32.partialorder %v350_v43, 8.507059e+37 }
 0x1dd   : > { %v528_v26 = vpop.eup %527 }
 0x1de   : > { %v530_v28 = vpop.eup %529  ;;  %v324_v29 = vadd.f32 1.0, %v528_v26  ;;  %v330_v30 = vadd.f32 %v526_v19, %v329_v25 }
 0x1df   : > { %v532_v31 = vpop.eup %531  ;;  %v342_v32 = vmul.f32 %v530_v28, %v323_v18  ;;  %vm347_vm13 = vweird.f32 %v530_v28 }
 0x1e0   : > { %533 = vrcp.f32 %v324_v29  ;;  %v334_v33 = vsel %vm333_vm10, %v526_v19, %v330_v30  ;;  %v372_v34 = vmul.f32 %v532_v31, %v325_v20  ;;  %vm377_vm14 = vweird.f32 %v532_v31  ;;  %vm348_vm0 = vmor %vm346_vm15, %vm347_vm13 }
 0x1e1   : > { %v339_v35 = vsel %vm336_vm11, %v338_v27, %v334_v33  ;;  %v343_v36 = vsub.f32 1.0, %v342_v32  ;;  %vm378_vm1 = vmor %vm376_vm12, %vm377_vm14  ;;  %v367_v55 = vand.u32 2147483648, %v324_v29  ;;  %v365_v57 = vand.u32 2147483647, %v324_v29 }
 0x1e2   : > { %388 = vperm.xlu2 %512, %v339_v35   ;;  %v373_v37 = vsub.f32 1.0, %v372_v34  ;;  %vm361_vm5 = vweird.f32 %v324_v29 }
 0x1e3   : > { %v344_v39 = vmul.f32 %v530_v28, %v343_v36  ;;  %v368_v59 = vor.u32 1.1754944e-38, %v367_v55  ;;  %vm366_vm7 = vcmp.eq.f32.partialorder %v365_v57, 8.507059e+37 }
 0x1e4   : > { %v374_v41 = vmul.f32 %v532_v31, %v373_v37 }
 0x1e5   : > { %v345_v44 = vadd.f32 %v530_v28, %v344_v39 }
 0x1e6   : > { %v534_v45 = vpop.eup %533  ;;  %v375_v46 = vadd.f32 %v532_v31, %v374_v41 }
 0x1e7   : > { %v349_v48 = vsel %vm348_vm0, %v530_v28, %v345_v44  ;;  %v357_v50 = vmul.f32 %v534_v45, %v324_v29  ;;  %vm362_vm4 = vweird.f32 %v534_v45 }
 0x1e8   : > { %v379_v51 = vsel %vm378_vm1, %v532_v31, %v375_v46  ;;  %v354_v53 = vsel %vm351_vm3, %v353_v49, %v349_v48  ;;  %vm363_vm6 = vmor %vm361_vm5, %vm362_vm4 }
 0x1e9   : > { %v384_v52 = vsel %vm381_vm2, %v383_v47, %v379_v51  ;;  %v358_v54 = vsub.f32 1.0, %v357_v50 }
 0x1ea   : > { %403 = vperm.xlu1 %514, %v384_v52   ;;  %393 = vperm.xlu2 %512, %v354_v53  }
 0x1eb   : > { %v359_v56 = vmul.f32 %v534_v45, %v358_v54 }
 0x1ed   : > { %v360_v58 = vadd.f32 %v534_v45, %v359_v56 }
 0x1ef   : > { %v364_v60 = vsel %vm363_vm6, %v534_v45, %v360_v58 }
 0x1f0   : > { %v369_v61 = vsel %vm366_vm7, %v368_v59, %v364_v60 }
 0x1f1   : > { %398 = vperm.xlu0 %513, %v369_v61  }
 0x23c   : > { %v389_v62 = vpop.permute.xlu2 %388 }
 0x23d   : > { %v406_v63 = vmul.f32 %v389_v62, %v597_v8  ;;  %v407_v3 = vmul.f32 %v389_v62, %v599_v9 }
 0x23f   : > { %414 = vst [vmem:[%s170_s30] sm:$0xff] %v406_v63 }
 0x240   : > { %415 = vst [vmem:[%s170_s30 + $0x8] sm:$0xff] %v407_v3 }
 0x244   : > { %v394_v5 = vpop.permute.xlu2 %393 }
 0x245   : > { %v408_v10 = vmul.f32 %v394_v5, %v585_v2  ;;  %v409_v11 = vmul.f32 %v394_v5, %v589_v4 }
 0x247   : > { %416 = vst [vmem:[%s170_s30 + $0x10] sm:$0xff] %v408_v10 }
 0x248   : > { %417 = vst [vmem:[%s170_s30 + $0x18] sm:$0xff] %v409_v11 }
 0x25c   : > { %v404_v12 = vpop.permute.xlu1 %403 }
 0x25d   : > { %v412_v13 = vmul.f32 %v404_v12, %v581_v0  ;;  %v413_v8 = vmul.f32 %v404_v12, %v583_v1 }
 0x25f   : > { %420 = vst [vmem:[%s170_s30 + $0x30] sm:$0xff] %v412_v13 }
 0x260   : > { %421 = vst [vmem:[%s170_s30 + $0x38] sm:$0xff] %v413_v8 }
 0x263   : > { %v399_v9 = vpop.permute.xlu0 %398 }
 0x264   : > { %v410_v14 = vmul.f32 %v399_v9, %v593_v6  ;;  %v411_v15 = vmul.f32 %v399_v9, %v595_v7 }
 0x266   : > { %418 = vst [vmem:[%s170_s30 + $0x20] sm:$0xff] %v410_v14 }
 0x267   : > { %419 = vst [vmem:[%s170_s30 + $0x28] sm:$0xff] %v411_v15 }
 0x268 PF: > { %s13_s12 = sadd.s32 1, %s541_s12  }
 0x269   : > { %p10_p4 = scmp.ge.s32.totalorder %s13_s12, 4  }
 0x26b   :  { %12 = sbr.rel (!%p10_p4) target bundleno = 1 (0x1), region = 62 }

</bundles_post_ra>
